<compile_context>
chip_gen: v5e
topology: v5e:2x2
jax: 0.10.0
libtpu: 0.0.40
codegen_flags: <defaults>
</compile_context>

<pallas_src>
import functools

import numpy as np
import jax
import jax.numpy as jnp
from jax.experimental import pallas as pl
from jax.experimental.pallas import tpu as pltpu


def _round_up(x, m):
    return ((x + m - 1) // m) * m


def _patch_embed_kernel(p_ref, w_ref, b_ref, o_ref):
    # p_ref: (tm, K)  patch pixels for a tile of rows (bf16 or f32)
    # w_ref: (K, N)   full projection weight (transposed)
    # b_ref: (1, N)   bias (f32)
    # o_ref: (tm, N)
    acc = jnp.dot(p_ref[...], w_ref[...], preferred_element_type=jnp.float32)
    o_ref[...] = (acc + b_ref[...].astype(jnp.float32)).astype(o_ref.dtype)


def patch_embed_matmul(patches, weight_t, bias, *, tm=1024, min_grid_steps=4,
                       out_dtype=None):
    """patches: (M, K), weight_t: (K, N), bias: (1, N) -> (M, N)."""
    if out_dtype is None:
        out_dtype = patches.dtype
    M, K = patches.shape
    _, N = weight_t.shape

    # --- conditional lane padding of the embed dim -------------------------
    # Only pad N up to 128 when the byte inflation is modest (<= 4/3, e.g.
    # Swin E=96 -> 128).  For small E (32 -> 128 would be 4x the output HBM
    # writes plus a slice pass) keep N as-is: the block last dim then equals
    # the full array dim, which satisfies the (8,128) rule.
    Np = _round_up(N, 128)
    pad_n = (Np != N) and (Np * 3 <= N * 4)
    if pad_n:
        weight_t = jnp.pad(weight_t, ((0, 0), (0, Np - N)))
        bias = jnp.pad(bias, ((0, 0), (0, Np - N)))
    else:
        Np = N

    # --- row tile -----------------------------------------------------------
    # Round tm to the input dtype's sublane multiple, and cap it so the grid
    # has >= min_grid_steps steps when M allows (keeps both v7x TensorCores
    # busy via the "parallel" axis).  No M padding: the tail block is clipped
    # by Pallas on the output store.
    sub = 16 if patches.dtype == jnp.bfloat16 else 8
    tm = _round_up(max(tm, sub), sub)
    tm = min(tm, _round_up(pl.cdiv(M, max(1, min_grid_steps)), sub))
    grid = (pl.cdiv(M, tm),)

    # True (unpadded) cost: helps XLA schedule the fused relayout correctly.
    flops = 2 * M * K * N
    bytes_accessed = (
        M * K * patches.dtype.itemsize
        + K * N * weight_t.dtype.itemsize
        + N * bias.dtype.itemsize
        + M * N * np.dtype(out_dtype).itemsize
    )

    out = pl.pallas_call(
        _patch_embed_kernel,
        out_shape=jax.ShapeDtypeStruct((M, Np), out_dtype),
        grid_spec=pltpu.PrefetchScalarGridSpec(
            num_scalar_prefetch=0,
            grid=grid,
            in_specs=[
                pl.BlockSpec((tm, K), lambda i: (i, 0)),
                pl.BlockSpec((K, Np), lambda i: (0, 0)),
                pl.BlockSpec((1, Np), lambda i: (0, 0)),
            ],
            out_specs=pl.BlockSpec((tm, Np), lambda i: (i, 0)),
        ),
        compiler_params=pltpu.CompilerParams(
            dimension_semantics=("parallel",),
            # Let XLA fuse the wrapper-side patch-extraction relayout into the
            # kernel's input stream instead of materializing it in HBM.
            allow_input_fusion=[True, False, False],
        ),
        cost_estimate=pl.CostEstimate(
            flops=flops, transcendentals=0, bytes_accessed=bytes_accessed),
    )(patches, weight_t, bias)

    if pad_n:
        out = out[:, :N]
    return out


def patch_embed_forward(x, weight, bias, patch_size, pad_to_patch_size=True,
                        use_bf16=True, tm=1024):
    """x: (B, C, H, W) NCHW, weight: (E, C, ph, pw), bias: (E,)."""
    ph, pw = patch_size
    B, C, H, W = x.shape
    E = weight.shape[0]
    out_dtype = x.dtype

    if pad_to_patch_size:
        pad_h = (-H) % ph
        pad_w = (-W) % pw
        if pad_h or pad_w:
            # PyTorch F.pad pads bottom of H and right of W with zeros.
            x = jnp.pad(x, ((0, 0), (0, 0), (0, pad_h), (0, pad_w)))
            H, W = H + pad_h, W + pad_w

    Hp, Wp = H // ph, W // pw

    if use_bf16:
        # Cast before the relayout so the transpose pass (if it materializes)
        # and the kernel's dominant patches read move half the bytes; the MXU
        # accumulates in f32 and the bias add stays f32.
        x = x.astype(jnp.bfloat16)
        weight = weight.astype(jnp.bfloat16)

    # Glue: extract non-overlapping patches in (C, ph, pw) flattening order
    # (matches Conv2d weight layout (E, C, ph, pw)).
    xp = x.reshape(B, C, Hp, ph, Wp, pw)
    xp = jnp.transpose(xp, (0, 2, 4, 1, 3, 5))            # (B, Hp, Wp, C, ph, pw)
    patches = xp.reshape(B * Hp * Wp, C * ph * pw)        # (M, K)

    w_t = weight.reshape(E, C * ph * pw).T                # (K, E)
    b = bias.reshape(1, E).astype(jnp.float32)

    out = patch_embed_matmul(patches, w_t, b, tm=tm, out_dtype=out_dtype)
    out = out.reshape(B, Hp * Wp, E)                      # (B, L, embed_dims)
    # norm_layer is None in this configuration -> no norm applied.
    return out


def _reference(x, weight, bias, patch_size, use_bf16):
    """Pure-JAX reference mirroring the kernel's dtype policy exactly."""
    ph, pw = patch_size
    B, C, H, W = x.shape
    E = weight.shape[0]
    pad_h = (-H) % ph
    pad_w = (-W) % pw
    if pad_h or pad_w:
        x = jnp.pad(x, ((0, 0), (0, 0), (0, pad_h), (0, pad_w)))
        H, W = H + pad_h, W + pad_w
    Hp, Wp = H // ph, W // pw
    if use_bf16:
        x = x.astype(jnp.bfloat16)
        weight = weight.astype(jnp.bfloat16)
    xp = x.reshape(B, C, Hp, ph, Wp, pw)
    xp = jnp.transpose(xp, (0, 2, 4, 1, 3, 5)).reshape(B * Hp * Wp, C * ph * pw)
    w_t = weight.reshape(E, -1).T
    y = jnp.dot(xp.astype(jnp.float32), w_t.astype(jnp.float32))
    y = y + bias.reshape(1, E).astype(jnp.float32)
    return y.reshape(B, Hp * Wp, E).astype(jnp.float32)


def _reference_conv(x, weight, bias, patch_size):
    """f32 reference using lax conv (PyTorch Conv2d + pad semantics)."""
    ph, pw = patch_size
    B, C, H, W = x.shape
    pad_h = (-H) % ph
    pad_w = (-W) % pw
    if pad_h or pad_w:
        x = jnp.pad(x, ((0, 0), (0, 0), (0, pad_h), (0, pad_w)))
    y = jax.lax.conv_general_dilated(
        x, weight, window_strides=(ph, pw), padding="VALID",
        dimension_numbers=("NCHW", "OIHW", "NCHW"))
    y = y + bias.reshape(1, -1, 1, 1)
    B, E, DH, DW = y.shape
    return jnp.transpose(y.reshape(B, E, DH * DW), (0, 2, 1))


if __name__ == "__main__":
    key = jax.random.PRNGKey(0)
    k1, k2, k3, k4 = jax.random.split(key, 4)

    # Small shapes consistent with the module: in_channels=3, patch/kernel=4,
    # embed_dims=32.
    B, C = 2, 3
    patch_size = (4, 4)
    embed_dims = 32

    weight = (jax.random.normal(
        k2, (embed_dims, C, patch_size[0], patch_size[1]), dtype=jnp.float32)
        * 0.02)
    bias = jax.random.normal(k3, (embed_dims,), dtype=jnp.float32) * 0.02

    fwd_bf16 = jax.jit(functools.partial(
        patch_embed_forward, patch_size=patch_size, use_bf16=True))
    fwd_f32 = jax.jit(functools.partial(
        patch_embed_forward, patch_size=patch_size, use_bf16=False))

    # Case 1: spatial size divisible by the patch size (16x16 -> 4x4 patches),
    # default bf16-input path; compared against a reference with the same
    # dtype policy (bf16 inputs, f32 accumulation).
    x1 = jax.random.normal(k1, (B, C, 16, 16), dtype=jnp.float32)
    out1 = jax.block_until_ready(fwd_bf16(x1, weight, bias))
    ref1 = _reference(x1, weight, bias, patch_size, use_bf16=True)
    assert out1.shape == (B, 16, embed_dims), out1.shape
    assert jnp.allclose(out1, ref1, atol=1e-4, rtol=1e-4), \
        float(jnp.max(jnp.abs(out1 - ref1)))
    # bf16-input result should still be close to the exact f32 conv.
    ref1_f32 = _reference_conv(x1, weight, bias, patch_size)
    assert jnp.allclose(out1, ref1_f32, atol=5e-2, rtol=5e-2), \
        float(jnp.max(jnp.abs(out1 - ref1_f32)))

    # Case 2: non-divisible spatial size (exercises pad_to_patch_size and the
    # tail-block clipping for M not a multiple of tm), strict-f32 path against
    # the lax conv reference.
    x2 = jax.random.normal(k4, (B, C, 18, 18), dtype=jnp.float32)
    out2 = jax.block_until_ready(fwd_f32(x2, weight, bias))
    ref2 = _reference_conv(x2, weight, bias, patch_size)
    assert out2.shape == (B, 25, embed_dims), out2.shape
    assert jnp.allclose(out2, ref2, atol=1e-4, rtol=1e-4), \
        float(jnp.max(jnp.abs(out2 - ref2)))

    print("KERNEL_OK")
</pallas_src>

<mosaic_0001>
module attributes {stable_mosaic.version = 11 : i64} {
  func.func @_patch_embed_kernel(%arg0: i32, %arg1: memref<16x48xbf16, #tpu.memory_space<vmem>>, %arg2: memref<48x32xbf16, #tpu.memory_space<vmem>>, %arg3: memref<1x32xf32, #tpu.memory_space<vmem>>, %arg4: memref<16x32xf32, #tpu.memory_space<vmem>>) attributes {dimension_semantics = [#tpu.dimension_semantics<parallel>], iteration_bounds = array<i64: 2>, scalar_prefetch = 0 : i64, scratch_operands = 0 : i64, tpu.core_type = #tpu.core_type<tc>, window_params = [{transform_indices = @transform_0, window_bounds = array<i64: 16, 48>}, {pipeline_mode = #tpu.pipeline_mode<synchronous>, transform_indices = @transform_1, window_bounds = array<i64: 48, 32>}, {pipeline_mode = #tpu.pipeline_mode<synchronous>, transform_indices = @transform_2, window_bounds = array<i64: 1, 32>}, {transform_indices = @transform_3, window_bounds = array<i64: 16, 32>}]} {
    %c0 = arith.constant 0 : index
    %c0_0 = arith.constant 0 : index
    %0 = vector.load %arg1[%c0, %c0_0] : memref<16x48xbf16, #tpu.memory_space<vmem>>, vector<16x48xbf16>
    %c0_1 = arith.constant 0 : index
    %c0_2 = arith.constant 0 : index
    %1 = vector.load %arg2[%c0_1, %c0_2] : memref<48x32xbf16, #tpu.memory_space<vmem>>, vector<48x32xbf16>
    %cst = arith.constant dense<0.000000e+00> : vector<16x32xf32>
    %2 = tpu.matmul %0, %1, %cst {dimension_numbers = #tpu.dot_dimension_numbers<[1], [0], [0], [1], [0, 0, 1, 1], [], []>} : vector<16x48xbf16>, vector<48x32xbf16>, vector<16x32xf32> -> vector<16x32xf32>
    %c0_3 = arith.constant 0 : index
    %c0_4 = arith.constant 0 : index
    %3 = vector.load %arg3[%c0_3, %c0_4] : memref<1x32xf32, #tpu.memory_space<vmem>>, vector<1x32xf32>
    %4 = vector.broadcast %3 : vector<1x32xf32> to vector<16x32xf32>
    %5 = arith.addf %2, %4 : vector<16x32xf32>
    %c0_5 = arith.constant 0 : index
    %c0_6 = arith.constant 0 : index
    %6 = vector.load %arg4[%c0_5, %c0_6] : memref<16x32xf32, #tpu.memory_space<vmem>>, vector<16x32xf32>
    tpu.vector_store %arg4[%c0_5, %c0_6], %5 {strides = array<i32>} : memref<16x32xf32, #tpu.memory_space<vmem>>, vector<16x32xf32>,
    return
  }
  func.func @transform_0(%arg0: i32) -> (i32, i32) {
    %c0_i32 = arith.constant 0 : i32
    %c0_i32_0 = arith.constant 0 : i32
    return %arg0, %c0_i32 : i32, i32
  }
  func.func @transform_1(%arg0: i32) -> (i32, i32) {
    %c0_i32 = arith.constant 0 : i32
    %c0_i32_0 = arith.constant 0 : i32
    %c0_i32_1 = arith.constant 0 : i32
    return %c0_i32, %c0_i32_0 : i32, i32
  }
  func.func @transform_2(%arg0: i32) -> (i32, i32) {
    %c0_i32 = arith.constant 0 : i32
    %c0_i32_0 = arith.constant 0 : i32
    %c0_i32_1 = arith.constant 0 : i32
    return %c0_i32, %c0_i32_0 : i32, i32
  }
  func.func @transform_3(%arg0: i32) -> (i32, i32) {
    %c0_i32 = arith.constant 0 : i32
    %c0_i32_0 = arith.constant 0 : i32
    return %arg0, %c0_i32 : i32, i32
  }
}

</mosaic_0001>

<bundles_post_ra>
// kernel: patch_embed_forward.1
= control target key start
LH: loop header
LB: loop body
LE: loop exit
PB: predicated region body
PF: predicated region fallthrough
CT: control target
= control target key end

     0   :  { %8 = vsyncpa [#allocation3], 0  ;;  %s565_s0 = inlined_call_operand.vmem [shape: bf16[32,48], index: 0, kind: input, shape index: {}]   ;;  %s566_s1 = inlined_call_operand.vmem [shape: bf16[48,32], index: 1, kind: input, shape index: {}]   ;;  %s567_s2 = inlined_call_operand.vmem [shape: f32[1,32], index: 2, kind: input, shape index: {}]   ;;  %s568_s3 = inlined_call_operand.hbm [shape: f32[32,32], index: 3, kind: output, shape index: {}]  }
   0x1   :  { %10 = vsyncpa [#allocation3 + $0x1], 0  ;;  %s469_s12 = smov 0   ;;  %s471_s13 = smov 0  }
   0x2   :  { %s473_s14 = smov 0   ;;  %s475_s15 = smov 0  }
   0x3 LB: > { %s490_s16 = sadd.s32 4294967295, %s445_s15   ;;  %s307_s17 = sadd.s32 4294967294, %s445_s15   ;;  %s445_s15 = sphi %s475_s15, %s574_s15   ;;  %s441_s14 = sphi %s473_s14, %s573_s14   ;;  %s437_s13 = sphi %s471_s13, %s572_s13   ;;  %s433_s12 = sphi %s469_s12, %s571_s12  }
   0x4   : > { %s494_s18 = sadd.s32 1, %s445_s15   ;;  %s91_s19 = sadd.s32 1, %s441_s14 }
   0x5   : > { %s88_s20 = ssub.s32 %s445_s15, %s494_s18  ;;  %p101_p0 = scmp.ne.s32.totalorder %s441_s14, %s437_s13 }
   0x6   : > { %p89_p1 = scmp.eq.s32.totalorder %s88_s20, 0  ;;  %p102_p2 = scmp.eq.s32.totalorder %s490_s16, 1 }
   0x7   : > { %p107_p3 = scmp.ne.s32.totalorder %s437_s13, %s433_s12  ;;  %p108_p4 = scmp.eq.s32.totalorder %s307_s17, 1 }
   0x8   : > { %s505_s21 = scalar_select %p89_p1, %s441_s14, %s91_s19  }
   0x9   : > { %p507_p5 = por %p102_p2, %p101_p0  ;;  %p511_p6 = por %p108_p4, %p107_p3 }
   0xa   : > { %p310_p7 = scmp.ge.s32.totalorder %s445_s15, 1  ;;  %p141_p8 = scmp.lt.s32.totalorder %s445_s15, 3 }
   0xc   : > { %p142_p9 = pnand %p310_p7, %p141_p8 }
   0xd   : > { %s312_s26 = sshll.u32 (!%p142_p9), %s490_s16, 1  ;;  %s162_s8 = sand.u32 (!%p142_p9), 1, %s437_s13  }
   0xe   : > { %145 = sbr.rel (%p142_p9) target bundleno = 171 (0xab), region = 32  ;;  %p166_p10 = scmp.lt.s32.totalorder (!%p142_p9), %s312_s26, 3 }
   0xf   : > { %s311_s9 = sshll.u32 (!%p142_p9), %s162_s8, 4  ;;  %s340_s17 = sshll.u32 (!%p142_p9), %s490_s16, 4 }
  0x10   : > { %s241_s24 = scalar_lea.hbm (!%p142_p9), %s568_s3, %s340_s17  ;;  %s164_s25 = scalar_lea.vmem (!%p142_p9), [#allocation2], %s311_s9 }
  0x11   : > { %s244_s27 = sshll.u32 (!%p142_p9), %s241_s24, 4  ;;  %s230_s28 = scalar_lea.sflag (!%p142_p9), [#allocation3], %s162_s8  ;;  %s245_s27 = int_to_ptr.hbm [resolvable:$true] %s244_s27 }
  0x12   : > { %s403_s5 = scalar_lea.hbm (!%p142_p9), %s568_s3, 32 }
  0x13   : > { %v339_v0 = vld [vmem:[%s566_s1 + $0x10] sm:$0xff]  ;;  %v338_v1 = vld [vmem:[%s566_s1 + $0x8] sm:$0xff]  ;;  %s576_s26 = smov (!%p166_p10, %s312_s26), 3  ;;  %v337_v2 = vld [vmem:[%s566_s1] sm:$0xff]  ;;  %vm208_vm0 = vcmask 392192   ;;  %vm226_vm1 = vcmask 261120  }
  0x14   : > { %217 = vmatpush.bf16.msra.mxu0 %v339_v0  ;;  %s313_s29 = sshll.u32 %s576_s26, 2  ;;  %v382_v4 = vld [vmem:[%s567_s2] ss:$0 sm:$0xff]  ;;  %s242_s26 = sshll.u32 %s164_s25, 4  ;;  %s243_s26 = int_to_ptr.vmem [resolvable:$true] %s242_s26 }
  0x15   : > { %s169_s7 = scalar_lea.vmem %s565_s0, %s313_s29  ;;  %s397_s29 = sshra.s32 %s245_s27, 4  ;;  %s398_s29 = int_to_ptr.hbm [resolvable:$true] %s397_s29 }
  0x16   : > { %v336_v3 = vld [vmem:[%s169_s7] sm:$0xff]  ;;  %s399_s16 = scalar_lea.hbm %s398_s29, 16  ;;  %p404_p0 = scmp.lt.s32.totalorder %s398_s29, %s568_s3 }
  0x17   : > { %p400_p11 = scmp.ne.s32.totalorder %s398_s29, %s399_s16  ;;  %p405_p1 = scmp.lt.s32.totalorder %s403_s5, %s399_s16 }
  0x18   : > { %218 = vmatpush.bf16.msra.mxu0 %v338_v1 }
  0x19   : > { %p401_p12 = pnand %p400_p11, %p507_p5  ;;  %p406_p2 = por %p405_p1, %p404_p0 }
  0x1b   : > { %p402_p13 = pneg %p401_p12 }
  0x1c   : > { %219 = vmatpush.bf16.msra.mxu0 %v337_v2 }
  0x1d   : > { %p407_p3 = pnand %p406_p2, %p402_p13 }
  0x1f   : > { %330 = vmatmul.msk.bf16.vlgmr.msra.gmra.mxu0 %vm208_vm0, %v336_v3 }
  0x9c   : > { %v221_v5 = vpop.f32.mrf.mxu0 }
  0x9d   : > { %v222_v6 = vadd.f32 %v382_v4, %v221_v5 }
  0x9f   : > { %227 = vst.msk [vmem:[%s164_s25] sm:$0xff] %vm226_vm1, %v222_v6 }
  0xa4   : > { %v223_v7 = vpop.f32.mrf.mxu0 }
  0xa5   : > { %v224_v8 = vadd.f32 %v382_v4, %v223_v7 }
  0xa7   : > { %228 = vst.msk [vmem:[%s164_s25 + $0x8] sm:$0xff] %vm226_vm1, %v224_v8 }
  0xa8   : > { %410 = shalt.err (!%p407_p3)
}
  0xa9   : > { %s447_s8 = smov 128   ;;  %s448_s9 = smov 8  }
  0xaa   : > { %341 = dma.vmem_to_hbm [thread:$0]  (%p507_p5), %s243_s26, 256, %s245_s27, %s230_s28, %s447_s8, %s447_s8, %s448_s9  }
  0xab PF: > { %p347_p4 = scmp.ge.s32.totalorder %s445_s15, 2  ;;  %s259_s10 = sand.u32 1, %s433_s12  }
  0xac   : > { %s260_s11 = scalar_lea.sflag [#allocation3], %s259_s10 }
  0xad   : > { %p344_p7 = pnand %p347_p4, %p511_p6 }
  0xaf   : > { %p345_p8 = pneg %p344_p7 }
  0xb1   : > { %428 = dma.done.wait (%p345_p8), %s260_s11, 256  }
  0xb2   : > { %430 = vsyncadd (%p345_p8), %s260_s11, 4294967040  ;;  %p13_p9 = scmp.ge.s32.totalorder %s494_s18, 4   ;;  %s571_s12 = smov %s437_s13 }
  0xb3   : > { %s572_s13 = smov %s441_s14  ;;  %s573_s14 = smov %s505_s21 }
  0xb4   : > { %s574_s15 = smov %s494_s18  ;;  %15 = sbr.rel (!%p13_p9) target bundleno = 3 (0x3), region = 67 }
  0xb9   :  { %266 = vsyncpa [#allocation3], 1 }
  0xba   :  { %268 = vsyncpa [#allocation3 + $0x1], 1 }

</bundles_post_ra>
